<compile_context>
chip_gen: v6e
topology: v6e:2x2x1
jax: 0.10.0
libtpu: 0.0.40
codegen_flags: <defaults>
</compile_context>

<pallas_src>
import functools

import jax
import jax.numpy as jnp
from jax.experimental import pallas as pl
from jax.experimental.pallas import tpu as pltpu


def _round_up(v, m):
    return (v + m - 1) // m * m


def _pick_tile_rows(n_rows, n_classes, in_dtype, *, max_rows=2048,
                    vmem_budget_bytes=20 * 1024 * 1024):
    """Largest row tile (multiple of 8) whose double-buffered input + f32
    temporaries fit comfortably in scoped VMEM on all generations."""
    lane_c = max(128, _round_up(n_classes, 128))       # VMEM lane padding
    in_bytes = jnp.dtype(in_dtype).itemsize
    # 2 input buffers (pipeline) + ~3 f32 temporaries of the same footprint
    per_row_bytes = lane_c * (2 * in_bytes + 3 * 4)
    tr = vmem_budget_bytes // per_row_bytes
    tr = min(tr, max_rows, _round_up(n_rows, 8))
    return int(max(8, (tr // 8) * 8))


def _label_smoothing_ce_kernel(x_ref, y_ref, out_ref, *, confidence, smoothing,
                               n_rows, tile_rows):
    """One grid step: (TR, C) logits + (TR, 1) labels -> scalar partial loss sum."""
    i = pl.program_id(0)

    x = x_ref[...].astype(jnp.float32)          # (TR, C), cast after load (bf16 ok)
    y = y_ref[...]                              # (TR, 1) int32
    tr, c = x.shape

    # Numerically-stable log-softmax pieces; log_p = shifted - lse.
    m = jnp.max(x, axis=-1, keepdims=True)
    shifted = x - m
    lse = jnp.log(jnp.sum(jnp.exp(shifted), axis=-1, keepdims=True))   # (TR, 1)

    # shifted[row, target[row]] via iota-compare + select (no one-hot multiply).
    cls = jax.lax.broadcasted_iota(jnp.int32, (tr, c), 1)
    tgt_shifted = jnp.sum(jnp.where(cls == y, shifted, 0.0),
                          axis=-1, keepdims=True)                      # (TR, 1)
    sum_shifted = jnp.sum(shifted, axis=-1, keepdims=True)             # (TR, 1)

    # confidence * nll + smoothing * smooth, with confidence + smoothing == 1:
    #   nll    = lse - shifted[target]
    #   smooth = lse - sum(shifted) / C
    loss = ((confidence + smoothing) * lse
            - confidence * tgt_shifted
            - (smoothing / c) * sum_shifted)                           # (TR, 1)

    # Mask rows past the true row count (ragged last tile / oversized block).
    # Select (not multiply) so garbage out-of-bounds data can't inject NaN/Inf.
    row = i * tile_rows + jax.lax.broadcasted_iota(jnp.int32, (tr, 1), 0)
    loss = jnp.where(row < n_rows, loss, 0.0)

    out_ref[...] = jnp.sum(loss).reshape(1, 1, 1)


def label_smoothing_cross_entropy(x, target, smoothing=0.1, *, tile_rows=None):
    """Pallas TPU implementation of LabelSmoothingCrossEntropy.forward (mean loss)."""
    assert smoothing < 1.0
    confidence = 1.0 - float(smoothing)

    x = jnp.asarray(x)                                   # keep dtype: no HBM upcast pass
    y = jnp.asarray(target, jnp.int32).reshape(-1, 1)
    n_rows, n_classes = x.shape

    tr = tile_rows if tile_rows is not None else _pick_tile_rows(n_rows, n_classes, x.dtype)
    tr = max(8, _round_up(min(int(tr), _round_up(n_rows, 8)), 8))
    n_tiles = pl.cdiv(n_rows, tr)

    kernel = functools.partial(
        _label_smoothing_ce_kernel,
        confidence=confidence, smoothing=float(smoothing),
        n_rows=int(n_rows), tile_rows=int(tr))

    partials = pl.pallas_call(
        kernel,
        out_shape=jax.ShapeDtypeStruct((n_tiles, 1, 1), jnp.float32),
        grid_spec=pltpu.PrefetchScalarGridSpec(
            num_scalar_prefetch=0,
            grid=(n_tiles,),
            in_specs=[
                # True class width: lane padding happens only in VMEM, not HBM.
                pl.BlockSpec((tr, n_classes), lambda i: (i, 0)),
                pl.BlockSpec((tr, 1), lambda i: (i, 0)),
            ],
            # One partial sum per tile -> no revisited output block, so the row
            # axis can be "parallel" (megacore split on v7x).
            out_specs=pl.BlockSpec((1, 1, 1), lambda i: (i, 0, 0)),
        ),
        compiler_params=pltpu.CompilerParams(
            dimension_semantics=("parallel",),
            vmem_limit_bytes=40 * 1024 * 1024),
    )(x, y)

    # Tiny finalization in plain JAX: sum of per-tile partials / N.
    return jnp.sum(partials) / jnp.float32(n_rows)


def _label_smoothing_ce_ref(x, target, smoothing):
    """Pure-JAX reference mirroring the PyTorch module."""
    logprobs = jax.nn.log_softmax(jnp.asarray(x, jnp.float32), axis=-1)
    nll = -jnp.take_along_axis(logprobs, target.astype(jnp.int32)[:, None], axis=-1)[:, 0]
    smooth = -jnp.mean(logprobs, axis=-1)
    return jnp.mean((1.0 - smoothing) * nll + smoothing * smooth)


if __name__ == "__main__":
    key = jax.random.PRNGKey(0)
    kx, ky = jax.random.split(key)

    # Shapes implied by the forward: x (N, num_classes), target (N,).
    # Deliberately not multiples of 8 / 128 to exercise the in-kernel masking
    # and the unpadded-class path.
    N, C = 203, 37
    smoothing = 0.1

    x = jax.random.normal(kx, (N, C), dtype=jnp.float32)
    target = jax.random.randint(ky, (N,), 0, C, dtype=jnp.int32)

    ref = _label_smoothing_ce_ref(x, target, smoothing)

    # Default (single large tile) path.
    out = label_smoothing_cross_entropy(x, target, smoothing)
    out = jax.block_until_ready(out)
    assert jnp.allclose(out, ref, rtol=1e-5, atol=1e-5), (out, ref)

    # Multi-tile path with a ragged last tile (forces masking + grid > 1).
    out_tiled = label_smoothing_cross_entropy(x, target, smoothing, tile_rows=64)
    out_tiled = jax.block_until_ready(out_tiled)
    assert jnp.allclose(out_tiled, ref, rtol=1e-5, atol=1e-5), (out_tiled, ref)

    print("KERNEL_OK")
</pallas_src>

<mosaic_0001>
module attributes {stable_mosaic.version = 11 : i64} {
  func.func @_label_smoothing_ce_kernel(%arg0: i32, %arg1: memref<208x37xf32, #tpu.memory_space<vmem>>, %arg2: memref<208x1xi32, #tpu.memory_space<vmem>>, %arg3: memref<1x1x1xf32, #tpu.memory_space<vmem>>) attributes {dimension_semantics = [#tpu.dimension_semantics<parallel>], iteration_bounds = array<i64: 1>, scalar_prefetch = 0 : i64, scratch_operands = 0 : i64, tpu.core_type = #tpu.core_type<tc>, window_params = [{transform_indices = @transform_0, window_bounds = array<i64: 208, 37>}, {transform_indices = @transform_1, window_bounds = array<i64: 208, 1>}, {transform_indices = @transform_2, window_bounds = array<i64: 1, 1, 1>}]} {
    %c0 = arith.constant 0 : index
    %c0_0 = arith.constant 0 : index
    %0 = vector.load %arg1[%c0, %c0_0] : memref<208x37xf32, #tpu.memory_space<vmem>>, vector<208x37xf32>
    %c0_1 = arith.constant 0 : index
    %c0_2 = arith.constant 0 : index
    %1 = vector.load %arg2[%c0_1, %c0_2] : memref<208x1xi32, #tpu.memory_space<vmem>>, vector<208x1xi32>
    %cst = arith.constant dense<0xFF800000> : vector<208xf32>
    %2 = vector.multi_reduction <maximumf>, %0, %cst [1] : vector<208x37xf32> to vector<208xf32>
    %3 = vector.shape_cast %2 : vector<208xf32> to vector<208x1xf32>
    %4 = vector.broadcast %3 : vector<208x1xf32> to vector<208x37xf32>
    %5 = arith.subf %0, %4 : vector<208x37xf32>
    %6 = math.exp %5 : vector<208x37xf32>
    %cst_3 = arith.constant dense<0.000000e+00> : vector<208xf32>
    %7 = vector.multi_reduction <add>, %6, %cst_3 [1] : vector<208x37xf32> to vector<208xf32>
    %8 = vector.shape_cast %7 : vector<208xf32> to vector<208x1xf32>
    %9 = math.log %8 : vector<208x1xf32>
    %10 = tpu.iota {dimensions = array<i32: 1>} : vector<208x37xi32>
    %11 = vector.broadcast %1 : vector<208x1xi32> to vector<208x37xi32>
    %12 = arith.cmpi eq, %10, %11 : vector<208x37xi32>
    %cst_4 = arith.constant 0.000000e+00 : f32
    %13 = vector.broadcast %cst_4 : f32 to vector<208x37xf32>
    %14 = arith.select %12, %5, %13 : vector<208x37xi1>, vector<208x37xf32>
    %cst_5 = arith.constant dense<0.000000e+00> : vector<208xf32>
    %15 = vector.multi_reduction <add>, %14, %cst_5 [1] : vector<208x37xf32> to vector<208xf32>
    %16 = vector.shape_cast %15 : vector<208xf32> to vector<208x1xf32>
    %cst_6 = arith.constant dense<0.000000e+00> : vector<208xf32>
    %17 = vector.multi_reduction <add>, %5, %cst_6 [1] : vector<208x37xf32> to vector<208xf32>
    %18 = vector.shape_cast %17 : vector<208xf32> to vector<208x1xf32>
    %cst_7 = arith.constant 1.000000e+00 : f32
    %19 = vector.broadcast %cst_7 : f32 to vector<208x1xf32>
    %20 = arith.mulf %19, %9 : vector<208x1xf32>
    %cst_8 = arith.constant 0.899999976 : f32
    %21 = vector.broadcast %cst_8 : f32 to vector<208x1xf32>
    %22 = arith.mulf %21, %16 : vector<208x1xf32>
    %23 = arith.subf %20, %22 : vector<208x1xf32>
    %cst_9 = arith.constant 0.00270270277 : f32
    %24 = vector.broadcast %cst_9 : f32 to vector<208x1xf32>
    %25 = arith.mulf %24, %18 : vector<208x1xf32>
    %26 = arith.subf %23, %25 : vector<208x1xf32>
    %c208_i32 = arith.constant 208 : i32
    %27 = arith.muli %arg0, %c208_i32 : i32
    %28 = tpu.iota {dimensions = array<i32: 0>} : vector<208x1xi32>
    %29 = vector.broadcast %27 : i32 to vector<208x1xi32>
    %30 = arith.addi %29, %28 : vector<208x1xi32>
    %c203_i32 = arith.constant 203 : i32
    %31 = vector.broadcast %c203_i32 : i32 to vector<208x1xi32>
    %32 = arith.cmpi slt, %30, %31 : vector<208x1xi32>
    %cst_10 = arith.constant 0.000000e+00 : f32
    %33 = vector.broadcast %cst_10 : f32 to vector<208x1xf32>
    %34 = arith.select %32, %26, %33 : vector<208x1xi1>, vector<208x1xf32>
    %35 = vector.shape_cast %34 : vector<208x1xf32> to vector<1x208x1xf32>
    %cst_11 = arith.constant dense<0.000000e+00> : vector<1xf32>
    %36 = vector.multi_reduction <add>, %35, %cst_11 [1, 2] : vector<1x208x1xf32> to vector<1xf32>
    %37 = vector.shape_cast %36 : vector<1xf32> to vector<1x1x1xf32>
    %38 = vector.extract %37[0, 0, 0] : f32 from vector<1x1x1xf32>
    %39 = vector.broadcast %38 : f32 to vector<1x1x1xf32>
    %c0_12 = arith.constant 0 : index
    %c0_13 = arith.constant 0 : index
    %c0_14 = arith.constant 0 : index
    %40 = vector.load %arg3[%c0_12, %c0_13, %c0_14] : memref<1x1x1xf32, #tpu.memory_space<vmem>>, vector<1x1x1xf32>
    tpu.vector_store %arg3[%c0_12, %c0_13, %c0_14], %39 {strides = array<i32>} : memref<1x1x1xf32, #tpu.memory_space<vmem>>, vector<1x1x1xf32>,
    return
  }
  func.func @transform_0(%arg0: i32) -> (i32, i32) {
    %c0_i32 = arith.constant 0 : i32
    %c0_i32_0 = arith.constant 0 : i32
    return %arg0, %c0_i32 : i32, i32
  }
  func.func @transform_1(%arg0: i32) -> (i32, i32) {
    %c0_i32 = arith.constant 0 : i32
    %c0_i32_0 = arith.constant 0 : i32
    return %arg0, %c0_i32 : i32, i32
  }
  func.func @transform_2(%arg0: i32) -> (i32, i32, i32) {
    %c0_i32 = arith.constant 0 : i32
    %c0_i32_0 = arith.constant 0 : i32
    %c0_i32_1 = arith.constant 0 : i32
    return %arg0, %c0_i32, %c0_i32_0 : i32, i32, i32
  }
}

</mosaic_0001>

<bundles_post_ra>
// kernel: tpu_custom_call.1
= control target key start
LH: loop header
LB: loop body
LE: loop exit
PB: predicated region body
PF: predicated region fallthrough
CT: control target
= control target key end

     0   :  { %vm64_vm0 = vcmask 302080   ;;  %v1060_v6 = vmov 0   ;;  %s1699_s0 = inlined_call_operand.vmem [shape: f32[203,37], index: 0, kind: input, shape index: {}]   ;;  %s1700_s1 = inlined_call_operand.vmem [shape: s32[203,1], index: 1, kind: input, shape index: {}]   ;;  %s1701_s2 = inlined_call_operand.hbm [shape: f32[1,1,1], index: 2, kind: output, shape index: {}]  }
   0x1   :  { %v1080_v0 = vld [vmem:[%s1699_s0 + $0x10] sm:$0xff]  ;;  %v1085_v1 = vld [vmem:[%s1699_s0] sm:$0xff]  ;;  %v1090_v2 = vld [vmem:[%s1699_s0 + $0x18] sm:$0xff]  ;;  %932 = vset.pattern.permute.xlu1 %v1060_v6  ;;  %933 = vset.pattern.permute.xlu0 %v1060_v6 }
   0x2   :  { %v71_v3 = vsel %vm64_vm0, %v1080_v0, -inf  ;;  %v65_v4 = vsel %vm64_vm0, %v1085_v1, -inf  ;;  %v1099_v5 = vld [vmem:[%s1699_s0 + $0x8] sm:$0xff]  ;;  %v74_v7 = vsel %vm64_vm0, %v1090_v2, -inf  ;;  %v1113_v10 = vld [vmem:[%s1699_s0 + $0x20] sm:$0xff]  ;;  %v1122_v13 = vld [vmem:[%s1699_s0 + $0x38] sm:$0xff] }
   0x3   :  { %72 = vmax.xlane.f32.xlu1 %v71_v3  ;;  %66 = vmax.xlane.f32.xlu0 %v65_v4  ;;  %v68_v8 = vsel %vm64_vm0, %v1099_v5, -inf  ;;  %v1108_v9 = vld [vmem:[%s1699_s0 + $0x28] sm:$0xff]  ;;  %v77_v12 = vsel %vm64_vm0, %v1113_v10, -inf  ;;  %v1127_v14 = vld [vmem:[%s1699_s0 + $0x30] sm:$0xff]  ;;  %v86_v15 = vsel %vm64_vm0, %v1122_v13, -inf  ;;  %v1141_v18 = vld [vmem:[%s1699_s0 + $0x40] sm:$0xff] }
   0x4   :  { %v80_v11 = vsel %vm64_vm0, %v1108_v9, -inf  ;;  %v83_v16 = vsel %vm64_vm0, %v1127_v14, -inf  ;;  %v1136_v17 = vld [vmem:[%s1699_s0 + $0x48] sm:$0xff]  ;;  %v89_v20 = vsel %vm64_vm0, %v1141_v18, -inf  ;;  %v1150_v21 = vld [vmem:[%s1699_s0 + $0x58] sm:$0xff]  ;;  %v1155_v22 = vld [vmem:[%s1699_s0 + $0x50] sm:$0xff] }
   0x5   :  { %v92_v19 = vsel %vm64_vm0, %v1136_v17, -inf }
   0x7   :  { %75 = vmax.xlane.f32.xlu1 %v74_v7  ;;  %69 = vmax.xlane.f32.xlu0 %v68_v8 }
   0xb   :  { %81 = vmax.xlane.f32.xlu1 %v80_v11  ;;  %78 = vmax.xlane.f32.xlu0 %v77_v12 }
   0xf   :  { %87 = vmax.xlane.f32.xlu1 %v86_v15  ;;  %84 = vmax.xlane.f32.xlu0 %v83_v16 }
  0x10   :  { %7 = vsyncpa [#allocation3], 0  ;;  %v98_v23 = vsel %vm64_vm0, %v1150_v21, -inf  ;;  %v95_v24 = vsel %vm64_vm0, %v1155_v22, -inf  ;;  %v1164_v25 = vld [vmem:[%s1699_s0 + $0x68] sm:$0xff]  ;;  %v1169_v26 = vld [vmem:[%s1699_s0 + $0x60] sm:$0xff] }
  0x11   :  { %v104_v27 = vsel %vm64_vm0, %v1164_v25, -inf  ;;  %v101_v28 = vsel %vm64_vm0, %v1169_v26, -inf  ;;  %v1178_v29 = vld [vmem:[%s1699_s0 + $0x78] sm:$0xff]  ;;  %v1183_v30 = vld [vmem:[%s1699_s0 + $0x70] sm:$0xff]  ;;  %v1192_v33 = vld [vmem:[%s1699_s0 + $0x88] sm:$0xff] }
  0x12   :  { %v110_v31 = vsel %vm64_vm0, %v1178_v29, -inf  ;;  %v107_v32 = vsel %vm64_vm0, %v1183_v30, -inf  ;;  %v1197_v34 = vld [vmem:[%s1699_s0 + $0x80] sm:$0xff]  ;;  %v116_v35 = vsel %vm64_vm0, %v1192_v33, -inf  ;;  %v1206_v37 = vld [vmem:[%s1699_s0 + $0x98] sm:$0xff]  ;;  %v1211_v38 = vld [vmem:[%s1699_s0 + $0x90] sm:$0xff] }
  0x13   :  { %93 = vmax.xlane.f32.xlu1 %v92_v19  ;;  %90 = vmax.xlane.f32.xlu0 %v89_v20  ;;  %v113_v36 = vsel %vm64_vm0, %v1197_v34, -inf  ;;  %v122_v39 = vsel %vm64_vm0, %v1206_v37, -inf  ;;  %v119_v40 = vsel %vm64_vm0, %v1211_v38, -inf  ;;  %v1220_v41 = vld [vmem:[%s1699_s0 + $0xa0] sm:$0xff]  ;;  %v1225_v42 = vld [vmem:[%s1699_s0 + $0xa8] sm:$0xff]  ;;  %v1234_v45 = vld [vmem:[%s1699_s0 + $0xb0] sm:$0xff] }
  0x14   :  { %v125_v43 = vsel %vm64_vm0, %v1220_v41, -inf  ;;  %v128_v44 = vsel %vm64_vm0, %v1225_v42, -inf  ;;  %v1239_v46 = vld [vmem:[%s1699_s0 + $0xb8] sm:$0xff]  ;;  %v131_v47 = vsel %vm64_vm0, %v1234_v45, -inf  ;;  %v1248_v49 = vld [vmem:[%s1699_s0 + $0xc0] sm:$0xff]  ;;  %v1253_v50 = vld [vmem:[%s1699_s0 + $0xc8] sm:$0xff] }
  0x15   :  { %v134_v48 = vsel %vm64_vm0, %v1239_v46, -inf  ;;  %v137_v51 = vsel %vm64_vm0, %v1248_v49, -inf  ;;  %v140_v52 = vsel %vm64_vm0, %v1253_v50, -inf  ;;  %v39_v53 = vld [vmem:[%s1700_s1 + $0x8] sm:$0xff]  ;;  %v41_v54 = vld [vmem:[%s1700_s1 + $0x18] sm:$0xff]  ;;  %v38_v55 = vld [vmem:[%s1700_s1] sm:$0xff] }
  0x16   :  { %v43_v56 = vld [vmem:[%s1700_s1 + $0x28] sm:$0xff]  ;;  %v40_v57 = vld [vmem:[%s1700_s1 + $0x10] sm:$0xff]  ;;  %v46_v58 = vld [vmem:[%s1700_s1 + $0x40] sm:$0xff] }
  0x17   :  { %99 = vmax.xlane.f32.xlu1 %v98_v23  ;;  %96 = vmax.xlane.f32.xlu0 %v95_v24  ;;  %v42_v59 = vld [vmem:[%s1700_s1 + $0x20] sm:$0xff]  ;;  %v51_v60 = vld [vmem:[%s1700_s1 + $0x68] sm:$0xff]  ;;  %v44_v61 = vld [vmem:[%s1700_s1 + $0x30] sm:$0xff] }
  0x18   :  { %v53_v62 = vld [vmem:[%s1700_s1 + $0x78] sm:$0xff]  ;;  %v55_v3 = vld [vmem:[%s1700_s1 + $0x88] sm:$0xff]  ;;  %v48_v7 = vld [vmem:[%s1700_s1 + $0x50] sm:$0xff] }
  0x19   :  { %v45_v63 = vld [vmem:[%s1700_s1 + $0x38] sm:$0xff]  ;;  %v47_v4 = vld [vmem:[%s1700_s1 + $0x48] sm:$0xff]  ;;  %v50_v15 = vld [vmem:[%s1700_s1 + $0x60] sm:$0xff] }
  0x1a   :  { %v57_v6 = vld [vmem:[%s1700_s1 + $0x98] sm:$0xff]  ;;  %v59_v8 = vld [vmem:[%s1700_s1 + $0xa8] sm:$0xff]  ;;  %v52_v19 = vld [vmem:[%s1700_s1 + $0x70] sm:$0xff] }
  0x1b   :  { %105 = vmax.xlane.f32.xlu1 %v104_v27  ;;  %102 = vmax.xlane.f32.xlu0 %v101_v28  ;;  %v49_v11 = vld [vmem:[%s1700_s1 + $0x58] sm:$0xff]  ;;  %v63_v16 = vld [vmem:[%s1700_s1 + $0xc8] sm:$0xff]  ;;  %v54_v20 = vld [vmem:[%s1700_s1 + $0x80] sm:$0xff] }
  0x1c   :  { %v61_v12 = vld [vmem:[%s1700_s1 + $0xb8] sm:$0xff]  ;;  %v56_v23 = vld [vmem:[%s1700_s1 + $0x90] sm:$0xff]  ;;  %v58_v24 = vld [vmem:[%s1700_s1 + $0xa0] sm:$0xff] }
  0x1d   :  { %v60_v27 = vld [vmem:[%s1700_s1 + $0xb0] sm:$0xff]  ;;  %v62_v28 = vld [vmem:[%s1700_s1 + $0xc0] sm:$0xff]  ;;  %s1061_s1 = smov [#allocation2]  }
  0x1e   :  { %s920_s27 = sshll.u32 %s1061_s1, 4  ;;  %s921_s27 = int_to_ptr.vmem [resolvable:$true] %s920_s27 }
  0x1f   :  { %111 = vmax.xlane.f32.xlu1 %v110_v31  ;;  %108 = vmax.xlane.f32.xlu0 %v107_v32  ;;  %s1038_s29 = scalar_lea.vmem %s921_s27, 16  ;;  %s1042_s30 = scalar_lea.vmem %s921_s27, 32 }
  0x20   :  { %p1039_p0 = scmp.ne.s32.totalorder %s921_s27, %s1038_s29  ;;  %p1043_p1 = scmp.lt.s32.totalorder %s921_s27, %s921_s27 }
  0x21   :  { %p1044_p2 = scmp.lt.s32.totalorder %s1042_s30, %s1038_s29 }
  0x23   :  { %117 = vmax.xlane.f32.xlu1 %v116_v35  ;;  %114 = vmax.xlane.f32.xlu0 %v113_v36  ;;  %p1045_p3 = por %p1044_p2, %p1043_p1 }
  0x25   :  { %p1046_p4 = pnand %p1045_p3, %p1039_p0 }
  0x27   :  { %123 = vmax.xlane.f32.xlu1 %v122_v39  ;;  %120 = vmax.xlane.f32.xlu0 %v119_v40 }
  0x2b   :  { %126 = vmax.xlane.f32.xlu1 %v125_v43  ;;  %129 = vmax.xlane.f32.xlu0 %v128_v44 }
  0x2f   :  { %132 = vmax.xlane.f32.xlu1 %v131_v47  ;;  %135 = vmax.xlane.f32.xlu0 %v134_v48 }
  0x33   :  { %138 = vmax.xlane.f32.xlu1 %v137_v51  ;;  %141 = vmax.xlane.f32.xlu0 %v140_v52 }
  0x44   :  { %357 = vperm.xlu1 %932, %v39_v53  }
  0x48   :  { %363 = vperm.xlu1 %932, %v41_v54  }
  0x49   :  { %354 = vperm.xlu0 %933, %v38_v55  }
  0x4c   :  { %369 = vperm.xlu1 %932, %v43_v56  }
  0x4d   :  { %360 = vperm.xlu0 %933, %v40_v57  }
  0x50   :  { %378 = vperm.xlu1 %932, %v46_v58  }
  0x51   :  { %366 = vperm.xlu0 %933, %v42_v59  }
  0x54   :  { %393 = vperm.xlu1 %932, %v51_v60  }
  0x55   :  { %372 = vperm.xlu0 %933, %v44_v61  }
  0x58   :  { %399 = vperm.xlu1 %932, %v53_v62  }
  0x59   :  { %375 = vperm.xlu0 %933, %v45_v63  }
  0x5c   :  { %405 = vperm.xlu1 %932, %v55_v3  }
  0x5d   :  { %381 = vperm.xlu0 %933, %v47_v4  }
  0x60   :  { %411 = vperm.xlu1 %932, %v57_v6  }
  0x61   :  { %384 = vperm.xlu0 %933, %v48_v7  }
  0x64   :  { %417 = vperm.xlu1 %932, %v59_v8  }
  0x65   :  { %387 = vperm.xlu0 %933, %v49_v11  }
  0x68   :  { %423 = vperm.xlu1 %932, %v61_v12  }
  0x69   :  { %390 = vperm.xlu0 %933, %v50_v15  }
  0x6c   :  { %429 = vperm.xlu1 %932, %v63_v16  }
  0x6d   :  { %396 = vperm.xlu0 %933, %v52_v19  }
  0x71   :  { %402 = vperm.xlu0 %933, %v54_v20  }
  0x75   :  { %408 = vperm.xlu0 %933, %v56_v23  }
  0x79   :  { %414 = vperm.xlu0 %933, %v58_v24  }
  0x7d   :  { %420 = vperm.xlu0 %933, %v60_v27  }
  0x81   :  { %426 = vperm.xlu0 %933, %v62_v28  }
  0x8c   :  { %v73_v31 = vpop.xlane.xlu1 %72  ;;  %v67_v32 = vpop.xlane.xlu0 %66 }
  0x8d   :  { %v1338_v35 = vsub.f32 %v1080_v0, %v73_v31  ;;  %v1341_v36 = vsub.f32 %v1085_v1, %v67_v32 }
  0x8f   :  { %v173_v39 = vmul.f32 1.442695, %v1338_v35  ;;  %v169_v40 = vmul.f32 1.442695, %v1341_v36 }
  0x90   :  { %v76_v43 = vpop.xlane.xlu1 %75  ;;  %v70_v44 = vpop.xlane.xlu0 %69 }
  0x91   :  { %934 = vpow2.f32 %v173_v39  ;;  %v1346_v47 = vsub.f32 %v1090_v2, %v76_v43  ;;  %v1349_v48 = vsub.f32 %v1099_v5, %v70_v44 }
  0x92   :  { %936 = vpow2.f32 %v169_v40 }
  0x93   :  { %v175_v0 = vmul.f32 1.442695, %v1346_v47  ;;  %v171_v51 = vmul.f32 1.442695, %v1349_v48 }
  0x94   :  { %v82_v1 = vpop.xlane.xlu1 %81  ;;  %v79_v52 = vpop.xlane.xlu0 %78 }
  0x95   :  { %938 = vpow2.f32 %v175_v0  ;;  %v1354_v53 = vsub.f32 %v1108_v9, %v82_v1  ;;  %v1357_v54 = vsub.f32 %v1113_v10, %v79_v52 }
  0x96   :  { %940 = vpow2.f32 %v171_v51 }
  0x97   :  { %v179_v2 = vmul.f32 1.442695, %v1354_v53  ;;  %v177_v5 = vmul.f32 1.442695, %v1357_v54 }
  0x98   :  { %v88_v55 = vpop.xlane.xlu1 %87  ;;  %v85_v56 = vpop.xlane.xlu0 %84 }
  0x99   :  { %942 = vpow2.f32 %v179_v2  ;;  %v1362_v57 = vsub.f32 %v1122_v13, %v88_v55  ;;  %v1365_v58 = vsub.f32 %v1127_v14, %v85_v56 }
  0x9a   :  { %944 = vpow2.f32 %v177_v5 }
  0x9b   :  { %v183_v9 = vmul.f32 1.442695, %v1362_v57  ;;  %v181_v10 = vmul.f32 1.442695, %v1365_v58 }
  0x9c   :  { %v94_v59 = vpop.xlane.xlu1 %93  ;;  %v91_v60 = vpop.xlane.xlu0 %90 }
  0x9d   :  { %946 = vpow2.f32 %v183_v9  ;;  %v1370_v61 = vsub.f32 %v1141_v18, %v91_v60  ;;  %v1395_v52 = vsub.f32 %v1136_v17, %v94_v59  ;;  %v351_v9 = vlaneseq }
  0x9e   :  { %v935_v62 = vpop.eup %934  ;;  %948 = vpow2.f32 %v181_v10 }
  0x9f   :  { %v937_v63 = vpop.eup %936  ;;  %v185_v13 = vmul.f32 1.442695, %v1370_v61  ;;  %v227_v7 = vsel %vm64_vm0, %v935_v62, 0.0  ;;  %v187_v55 = vmul.f32 1.442695, %v1395_v52  ;;  %v1412_v17 = vand.u32 127, %v351_v9 }
  0xa0   :  { %v100_v3 = vpop.xlane.xlu1 %99  ;;  %v221_v14 = vsel %vm64_vm0, %v937_v63, 0.0  ;;  %v97_v4 = vpop.xlane.xlu0 %96 }
  0xa1   :  { %222 = vadd.xlane.f32.xlu0 %v221_v14  ;;  %950 = vpow2.f32 %v185_v13  ;;  %v1407_v60 = vsub.f32 %v1155_v22, %v97_v4  ;;  %v1415_v59 = vsub.f32 %v1150_v21, %v100_v3 }
  0xa2   :  { %v939_v6 = vpop.eup %938  ;;  %952 = vpow2.f32 %v187_v55 }
  0xa3   :  { %v941_v8 = vpop.eup %940  ;;  %v230_v16 = vsel %vm64_vm0, %v939_v6, 0.0  ;;  %v189_v63 = vmul.f32 1.442695, %v1407_v60  ;;  %v191_v22 = vmul.f32 1.442695, %v1415_v59 }
  0xa4   :  { %v106_v11 = vpop.xlane.xlu1 %105  ;;  %v224_v12 = vsel %vm64_vm0, %v941_v8, 0.0  ;;  %v103_v18 = vpop.xlane.xlu0 %102 }
  0xa5   :  { %225 = vadd.xlane.f32.xlu1 %v224_v12  ;;  %228 = vadd.xlane.f32.xlu0 %v227_v7  ;;  %954 = vpow2.f32 %v189_v63  ;;  %v1427_v3 = vsub.f32 %v1169_v26, %v103_v18 }
  0xa6   :  { %v943_v15 = vpop.eup %942  ;;  %956 = vpow2.f32 %v191_v22 }
  0xa7   :  { %v945_v19 = vpop.eup %944  ;;  %v236_v28 = vsel %vm64_vm0, %v943_v15, 0.0 }
  0xa8   :  { %v1377_v20 = vpop.xlane.xlu1 %111  ;;  %v233_v23 = vsel %vm64_vm0, %v945_v19, 0.0  ;;  %v1380_v24 = vpop.xlane.xlu0 %108 }
  0xa9   :  { %234 = vadd.xlane.f32.xlu1 %v233_v23  ;;  %231 = vadd.xlane.f32.xlu0 %v230_v16  ;;  %v1433_v23 = vsub.f32 %v1164_v25, %v106_v11  ;;  %v564_v25 = vsel %vm64_vm0, %v1349_v48, 0.0 }
  0xaa   :  { %v947_v27 = vpop.eup %946 }
  0xab   :  { %v949_v31 = vpop.eup %948  ;;  %v242_v43 = vsel %vm64_vm0, %v947_v27, 0.0  ;;  %v193_v27 = vmul.f32 1.442695, %v1427_v3  ;;  %v195_v18 = vmul.f32 1.442695, %v1433_v23 }
  0xac   :  { %v1383_v32 = vpop.xlane.xlu1 %117  ;;  %v239_v39 = vsel %vm64_vm0, %v949_v31, 0.0  ;;  %v1386_v40 = vpop.xlane.xlu0 %114  ;;  %v561_v31 = vsel %vm64_vm0, %v1341_v36, 0.0 }
  0xad   :  { %240 = vadd.xlane.f32.xlu1 %v239_v39  ;;  %237 = vadd.xlane.f32.xlu0 %v236_v28  ;;  %958 = vpow2.f32 %v193_v27 }
  0xae   :  { %v951_v44 = vpop.eup %950  ;;  %960 = vpow2.f32 %v195_v18 }
  0xaf   :  { %v245_v51 = vsel %vm64_vm0, %v951_v44, 0.0  ;;  %v953_v12 = vpop.eup %952  ;;  %v1447_v44 = vsub.f32 %v1183_v30, %v1380_v24  ;;  %v567_v30 = vsel %vm64_vm0, %v1338_v35, 0.0 }
  0xb0   :  { %v1389_v0 = vpop.xlane.xlu1 %123  ;;  %v1392_v1 = vpop.xlane.xlu0 %120  ;;  %v248_v28 = vsel %vm64_vm0, %v953_v12, 0.0 }
  0xb1   :  { %246 = vadd.xlane.f32.xlu1 %v245_v51  ;;  %243 = vadd.xlane.f32.xlu0 %v242_v43 }
  0xb2   :  { %v955_v11 = vpop.eup %954 }
  0xb3   :  { %v251_v51 = vsel %vm64_vm0, %v955_v11, 0.0  ;;  %v957_v63 = vpop.eup %956 }
  0xb4   :  { %v1397_v2 = vpop.xlane.xlu1 %126  ;;  %v1399_v5 = vpop.xlane.xlu0 %129  ;;  %v254_v24 = vsel %vm64_vm0, %v957_v63, 0.0 }
  0xb8   :  { %v1402_v56 = vpop.xlane.xlu1 %132  ;;  %v1404_v10 = vpop.xlane.xlu0 %135 }
  0xbc   :  { %v1409_v62 = vpop.xlane.xlu1 %138  ;;  %v1418_v13 = vpop.xlane.xlu0 %141 }
  0xc0   :  { %v358_v14 = vpop.permute.xlu1 %357 }
  0xc1   :  { %vm432_vm1 = vcmp.eq.s32.totalorder %v1412_v17, %v358_v14  ;;  %v197_v14 = vmul.f32 1.442695, %v1447_v44 }
  0xc2   :  { %v458_v6 = vsel %vm432_vm1, %v1349_v48, 0.0  ;;  %v1454_v48 = vsub.f32 %v1178_v29, %v1377_v20  ;;  %v570_v29 = vsel %vm64_vm0, %v1346_v47, 0.0 }
  0xc3   :  { %v486_v4 = vsel %vm64_vm0, %v458_v6, 0.0  ;;  %962 = vpow2.f32 %v197_v14 }
  0xc4   :  { %487 = vadd.xlane.f32.xlu1 %v486_v4  ;;  %v355_v7 = vpop.permute.xlu0 %354  ;;  %v364_v16 = vpop.permute.xlu1 %363  ;;  %v199_v22 = vmul.f32 1.442695, %v1454_v48 }
  0xc5   :  { %vm431_vm2 = vcmp.eq.s32.totalorder %v1412_v17, %v355_v7  ;;  %vm434_vm4 = vcmp.eq.s32.totalorder %v1412_v17, %v364_v16  ;;  %v959_v4 = vpop.eup %958  ;;  %v1476_v16 = vsub.f32 %v1192_v33, %v1383_v32  ;;  %v576_v33 = vsel %vm64_vm0, %v1354_v53, 0.0 }
  0xc6   :  { %v457_v21 = vsel %vm431_vm2, %v1341_v36, 0.0  ;;  %v460_v39 = vsel %vm434_vm4, %v1346_v47, 0.0  ;;  %964 = vpow2.f32 %v199_v22  ;;  %v257_v12 = vsel %vm64_vm0, %v959_v4, 0.0 }
  0xc7   :  { %v483_v8 = vsel %vm64_vm0, %v457_v21, 0.0  ;;  %v492_v55 = vsel %vm64_vm0, %v460_v39, 0.0  ;;  %v1469_v21 = vsub.f32 %v1197_v34, %v1386_v40  ;;  %v573_v34 = vsel %vm64_vm0, %v1357_v54, 0.0 }
  0xc8   :  { %484 = vadd.xlane.f32.xlu0 %v483_v8  ;;  %v361_v15 = vpop.permute.xlu0 %360  ;;  %v370_v36 = vpop.permute.xlu1 %369 }
  0xc9   :  { %vm433_vm3 = vcmp.eq.s32.totalorder %v1412_v17, %v361_v15  ;;  %vm436_vm6 = vcmp.eq.s32.totalorder %v1412_v17, %v370_v36  ;;  %v961_v15 = vpop.eup %960 }
  0xca   :  { %v459_v19 = vsel %vm433_vm3, %v1338_v35, 0.0  ;;  %v462_v35 = vsel %vm436_vm6, %v1354_v53, 0.0  ;;  %v260_v27 = vsel %vm64_vm0, %v961_v15, 0.0 }
  0xcb   :  { %v489_v26 = vsel %vm64_vm0, %v459_v19, 0.0  ;;  %v498_v8 = vsel %vm64_vm0, %v462_v35, 0.0  ;;  %v201_v19 = vmul.f32 1.442695, %v1469_v21  ;;  %v588_v35 = vsel %vm64_vm0, %v1395_v52, 0.0 }
  0xcc   :  { %249 = vadd.xlane.f32.xlu0 %v248_v28  ;;  %490 = vadd.xlane.f32.xlu1 %v489_v26  ;;  %v367_v43 = vpop.permute.xlu0 %366  ;;  %v203_v28 = vmul.f32 1.442695, %v1476_v16 }
  0xcd   :  { %vm435_vm5 = vcmp.eq.s32.totalorder %v1412_v17, %v367_v43  ;;  %966 = vpow2.f32 %v201_v19  ;;  %v1498_v43 = vsub.f32 %v1206_v37, %v1389_v0  ;;  %v582_v37 = vsel %vm64_vm0, %v1362_v57, 0.0 }
  0xce   :  { %v461_v6 = vsel %vm435_vm5, %v1357_v54, 0.0  ;;  %v379_v54 = vpop.permute.xlu1 %378  ;;  %968 = vpow2.f32 %v203_v28 }
  0xcf   :  { %v495_v20 = vsel %vm64_vm0, %v461_v6, 0.0  ;;  %vm439_vm9 = vcmp.eq.s32.totalorder %v1412_v17, %v379_v54  ;;  %v207_v63 = vmul.f32 1.442695, %v1498_v43 }
  0xd0   :  { %562 = vadd.xlane.f32.xlu0 %v561_v31  ;;  %565 = vadd.xlane.f32.xlu1 %v564_v25  ;;  %v373_v7 = vpop.permute.xlu0 %372  ;;  %v963_v26 = vpop.eup %962  ;;  %v1491_v31 = vsub.f32 %v1211_v38, %v1392_v1  ;;  %v579_v38 = vsel %vm64_vm0, %v1365_v58, 0.0 }
  0xd1   :  { %vm437_vm7 = vcmp.eq.s32.totalorder %v1412_v17, %v373_v7  ;;  %v263_v25 = vsel %vm64_vm0, %v963_v26, 0.0  ;;  %v1557_v26 = vsub.f32 %v1248_v49, %v1409_v62  ;;  %v597_v49 = vsel %vm64_vm0, %v1427_v3, 0.0 }
  0xd2   :  { %v463_v40 = vsel %vm437_vm7, %v1365_v58, 0.0 }
  0xd3   :  { %v501_v32 = vsel %vm64_vm0, %v463_v40, 0.0  ;;  %v965_v39 = vpop.eup %964 }
  0xd4   :  { %252 = vadd.xlane.f32.xlu0 %v251_v51  ;;  %493 = vadd.xlane.f32.xlu1 %v492_v55  ;;  %v376_v47 = vpop.permute.xlu0 %375  ;;  %v205_v51 = vmul.f32 1.442695, %v1491_v31  ;;  %v266_v1 = vsel %vm64_vm0, %v965_v39, 0.0  ;;  %v465_v55 = vsel %vm439_vm9, %v1370_v61, 0.0  ;;  %v1565_v39 = vsub.f32 %v1253_v50, %v1418_v13 }
  0xd5   :  { %vm438_vm8 = vcmp.eq.s32.totalorder %v1412_v17, %v376_v47  ;;  %v507_v36 = vsel %vm64_vm0, %v465_v55, 0.0 }
  0xd6   :  { %v464_v18 = vsel %vm438_vm8, %v1362_v57, 0.0  ;;  %970 = vpow2.f32 %v205_v51  ;;  %v219_v51 = vmul.f32 1.442695, %v1565_v39 }
  0xd7   :  { %v504_v11 = vsel %vm64_vm0, %v464_v18, 0.0  ;;  %972 = vpow2.f32 %v207_v63 }
  0xd8   :  { %568 = vadd.xlane.f32.xlu0 %v567_v30  ;;  %255 = vadd.xlane.f32.xlu1 %v254_v24  ;;  %v382_v53 = vpop.permute.xlu0 %381  ;;  %v1513_v30 = vsub.f32 %v1220_v41, %v1397_v2  ;;  %v585_v41 = vsel %vm64_vm0, %v1370_v61, 0.0 }
  0xd9   :  { %vm440_vm10 = vcmp.eq.s32.totalorder %v1412_v17, %v382_v53 }
  0xda   :  { %v967_v0 = vpop.eup %966  ;;  %v466_v58 = vsel %vm440_vm10, %v1395_v52, 0.0  ;;  %v394_v52 = vpop.permute.xlu1 %393 }
  0xdb   :  { %v269_v24 = vsel %vm64_vm0, %v967_v0, 0.0  ;;  %v510_v6 = vsel %vm64_vm0, %v466_v58, 0.0  ;;  %v969_v22 = vpop.eup %968  ;;  %vm444_vm14 = vcmp.eq.s32.totalorder %v1412_v17, %v394_v52  ;;  %v603_v0 = vsel %vm64_vm0, %v1447_v44, 0.0 }
  0xdc   :  { %571 = vadd.xlane.f32.xlu1 %v570_v29  ;;  %496 = vadd.xlane.f32.xlu0 %v495_v20  ;;  %v385_v14 = vpop.permute.xlu0 %384  ;;  %v209_v29 = vmul.f32 1.442695, %v1513_v30  ;;  %v1521_v20 = vsub.f32 %v1225_v42, %v1399_v5  ;;  %v272_v2 = vsel %vm64_vm0, %v969_v22, 0.0  ;;  %v615_v52 = vsel %vm64_vm0, %v1491_v31, 0.0 }
  0xdd   :  { %vm441_vm11 = vcmp.eq.s32.totalorder %v1412_v17, %v385_v14 }
  0xde   :  { %v467_v4 = vsel %vm441_vm11, %v1407_v60, 0.0  ;;  %974 = vpow2.f32 %v209_v29  ;;  %v211_v7 = vmul.f32 1.442695, %v1521_v20 }
  0xdf   :  { %v513_v42 = vsel %vm64_vm0, %v467_v4, 0.0 }
  0xe0   :  { %499 = vadd.xlane.f32.xlu1 %v498_v8  ;;  %258 = vadd.xlane.f32.xlu0 %v257_v12  ;;  %v388_v57 = vpop.permute.xlu0 %387  ;;  %976 = vpow2.f32 %v211_v7  ;;  %v1535_v12 = vsub.f32 %v1234_v45, %v1402_v56  ;;  %v591_v45 = vsel %vm64_vm0, %v1407_v60, 0.0  ;;  %v470_v60 = vsel %vm444_vm14, %v1433_v23, 0.0 }
  0xe1   :  { %vm442_vm12 = vcmp.eq.s32.totalorder %v1412_v17, %v388_v57  ;;  %v522_v18 = vsel %vm64_vm0, %v470_v60, 0.0 }
  0xe2   :  { %v468_v61 = vsel %vm442_vm12, %v1415_v59, 0.0 }
  0xe3   :  { %v971_v5 = vpop.eup %970  ;;  %v516_v47 = vsel %vm64_vm0, %v468_v61, 0.0 }
  0xe4   :  { %261 = vadd.xlane.f32.xlu1 %v260_v27  ;;  %574 = vadd.xlane.f32.xlu0 %v573_v34  ;;  %v391_v8 = vpop.permute.xlu0 %390  ;;  %v275_v15 = vsel %vm64_vm0, %v971_v5, 0.0  ;;  %v973_v19 = vpop.eup %972  ;;  %v213_v27 = vmul.f32 1.442695, %v1535_v12  ;;  %v1543_v34 = vsub.f32 %v1239_v46, %v1404_v10 }
  0xe5   :  { %vm443_vm13 = vcmp.eq.s32.totalorder %v1412_v17, %v391_v8  ;;  %v278_v56 = vsel %vm64_vm0, %v973_v19, 0.0  ;;  %v612_v8 = vsel %vm64_vm0, %v1476_v16, 0.0 }
  0xe6   :  { %v469_v40 = vsel %vm443_vm13, %v1427_v3, 0.0  ;;  %978 = vpow2.f32 %v213_v27  ;;  %v215_v28 = vmul.f32 1.442695, %v1543_v34  ;;  %vm912_vm13 = vcmask 0  }
  0xe7   :  { %v519_v46 = vsel %vm64_vm0, %v469_v40, 0.0  ;;  %v618_v40 = vsel %vm64_vm0, %v1498_v43, 0.0 }
  0xe8   :  { %577 = vadd.xlane.f32.xlu1 %v576_v33  ;;  %502 = vadd.xlane.f32.xlu0 %v501_v32  ;;  %v594_v33 = vsel %vm64_vm0, %v1415_v59, 0.0  ;;  %v397_v32 = vpop.permute.xlu0 %396  ;;  %980 = vpow2.f32 %v215_v28  ;;  %v400_v59 = vpop.permute.xlu1 %399 }
  0xe9   :  { %vm445_vm15 = vcmp.eq.s32.totalorder %v1412_v17, %v397_v32  ;;  %vm446_vm1 = vcmp.eq.s32.totalorder %v1412_v17, %v400_v59  ;;  %v624_v32 = vsel %vm64_vm0, %v1521_v20, 0.0  ;;  %v627_v59 = vsel %vm64_vm0, %v1535_v12, 0.0 }
  0xea   :  { %v471_v62 = vsel %vm445_vm15, %v1447_v44, 0.0 }
  0xeb   :  { %v975_v10 = vpop.eup %974  ;;  %v525_v50 = vsel %vm64_vm0, %v471_v62, 0.0 }
  0xec   :  { %264 = vadd.xlane.f32.xlu0 %v263_v25  ;;  %505 = vadd.xlane.f32.xlu1 %v504_v11  ;;  %v281_v54 = vsel %vm64_vm0, %v975_v10, 0.0  ;;  %v217_v11 = vmul.f32 1.442695, %v1557_v26  ;;  %v403_v3 = vpop.permute.xlu0 %402  ;;  %v406_v55 = vpop.permute.xlu1 %405 }
  0xed   :  { %v977_v25 = vpop.eup %976  ;;  %vm447_vm2 = vcmp.eq.s32.totalorder %v1412_v17, %v403_v3  ;;  %vm448_vm3 = vcmp.eq.s32.totalorder %v1412_v17, %v406_v55 }
  0xee   :  { %v284_v53 = vsel %vm64_vm0, %v977_v25, 0.0  ;;  %982 = vpow2.f32 %v217_v11  ;;  %v473_v14 = vsel %vm447_vm2, %v1469_v21, 0.0  ;;  %v474_v29 = vsel %vm448_vm3, %v1476_v16, 0.0 }
  0xef   :  { %984 = vpow2.f32 %v219_v51  ;;  %v531_v22 = vsel %vm64_vm0, %v473_v14, 0.0 }
  0xf0   :  { %580 = vadd.xlane.f32.xlu0 %v579_v38  ;;  %267 = vadd.xlane.f32.xlu1 %v266_v1  ;;  %v600_v38 = vsel %vm64_vm0, %v1433_v23, 0.0  ;;  %v472_v1 = vsel %vm446_vm1, %v1454_v48, 0.0  ;;  %v412_v58 = vpop.permute.xlu1 %411 }
  0xf1   :  { %v528_v63 = vsel %vm64_vm0, %v472_v1, 0.0  ;;  %vm450_vm5 = vcmp.eq.s32.totalorder %v1412_v17, %v412_v58 }
  0xf3   :  { %v979_v13 = vpop.eup %978 }
  0xf4   :  { %508 = vadd.xlane.f32.xlu0 %v507_v36  ;;  %583 = vadd.xlane.f32.xlu1 %v582_v37  ;;  %v287_v36 = vsel %vm64_vm0, %v979_v13, 0.0 }
  0xf5   :  { %v981_v37 = vpop.eup %980 }
  0xf6   :  { %v290_v23 = vsel %vm64_vm0, %v981_v37, 0.0 }
  0xf8   :  { %270 = vadd.xlane.f32.xlu0 %v269_v24  ;;  %511 = vadd.xlane.f32.xlu1 %v510_v6  ;;  %v409_v24 = vpop.permute.xlu0 %408  ;;  %v606_v6 = vsel %vm64_vm0, %v1454_v48, 0.0 }
  0xf9   :  { %vm449_vm4 = vcmp.eq.s32.totalorder %v1412_v17, %v409_v24 }
  0xfb   :  { %v983_v57 = vpop.eup %982 }
  0xfc   :  { %586 = vadd.xlane.f32.xlu0 %v585_v41  ;;  %273 = vadd.xlane.f32.xlu1 %v272_v2  ;;  %v418_v41 = vpop.permute.xlu1 %417  ;;  %v415_v44 = vpop.permute.xlu0 %414  ;;  %v534_v2 = vsel %vm64_vm0, %v474_v29, 0.0  ;;  %v293_v4 = vsel %vm64_vm0, %v983_v57, 0.0 }
  0xfd   :  { %v985_v7 = vpop.eup %984  ;;  %vm451_vm6 = vcmp.eq.s32.totalorder %v1412_v17, %v415_v44  ;;  %vm452_vm7 = vcmp.eq.s32.totalorder %v1412_v17, %v418_v41 }
  0xfe   :  { %v296_v48 = vsel %vm64_vm0, %v985_v7, 0.0 }
 0x100   :  { %589 = vadd.xlane.f32.xlu1 %v588_v35  ;;  %514 = vadd.xlane.f32.xlu0 %v513_v42  ;;  %v609_v35 = vsel %vm64_vm0, %v1469_v21, 0.0  ;;  %v475_v42 = vsel %vm449_vm4, %v1491_v31, 0.0  ;;  %v424_v5 = vpop.permute.xlu1 %423  ;;  %v421_v61 = vpop.permute.xlu0 %420 }
 0x101   :  { %vm453_vm8 = vcmp.eq.s32.totalorder %v1412_v17, %v421_v61  ;;  %vm454_vm9 = vcmp.eq.s32.totalorder %v1412_v17, %v424_v5 }
 0x102   :  { %v479_v60 = vsel %vm453_vm8, %v1535_v12, 0.0 }
 0x104   :  { %276 = vadd.xlane.f32.xlu0 %v275_v15  ;;  %517 = vadd.xlane.f32.xlu1 %v516_v47  ;;  %v537_v15 = vsel %vm64_vm0, %v475_v42, 0.0  ;;  %v476_v47 = vsel %vm450_vm5, %v1498_v43, 0.0  ;;  %v430_v21 = vpop.permute.xlu1 %429  ;;  %v427_v19 = vpop.permute.xlu0 %426 }
 0x105   :  { %v540_v27 = vsel %vm64_vm0, %v476_v47, 0.0  ;;  %vm455_vm10 = vcmp.eq.s32.totalorder %v1412_v17, %v427_v19  ;;  %vm456_vm11 = vcmp.eq.s32.totalorder %v1412_v17, %v430_v21 }
 0x106   :  { %v482_v51 = vsel %vm456_vm11, %v1565_v39, 0.0 }
 0x107   :  { %v558_v13 = vsel %vm64_vm0, %v482_v51, 0.0 }
 0x108   :  { %592 = vadd.xlane.f32.xlu0 %v591_v45  ;;  %279 = vadd.xlane.f32.xlu1 %v278_v56  ;;  %v477_v45 = vsel %vm451_vm6, %v1513_v30, 0.0 }
 0x109   :  { %v543_v28 = vsel %vm64_vm0, %v477_v45, 0.0 }
 0x10c   :  { %595 = vadd.xlane.f32.xlu1 %v594_v33  ;;  %520 = vadd.xlane.f32.xlu0 %v519_v46  ;;  %v478_v33 = vsel %vm452_vm7, %v1521_v20, 0.0  ;;  %v621_v46 = vsel %vm64_vm0, %v1513_v30, 0.0 }
 0x10d   :  { %v546_v10 = vsel %vm64_vm0, %v478_v33, 0.0 }
 0x110   :  { %523 = vadd.xlane.f32.xlu1 %v522_v18  ;;  %282 = vadd.xlane.f32.xlu0 %v281_v54  ;;  %v549_v18 = vsel %vm64_vm0, %v479_v60, 0.0  ;;  %v480_v54 = vsel %vm454_vm9, %v1543_v34, 0.0 }
 0x111   :  { %v552_v11 = vsel %vm64_vm0, %v480_v54, 0.0 }
 0x114   :  { %285 = vadd.xlane.f32.xlu1 %v284_v53  ;;  %598 = vadd.xlane.f32.xlu0 %v597_v49  ;;  %v481_v53 = vsel %vm455_vm10, %v1557_v26, 0.0  ;;  %v630_v49 = vsel %vm64_vm0, %v1543_v34, 0.0 }
 0x115   :  { %v555_v62 = vsel %vm64_vm0, %v481_v53, 0.0 }
 0x118   :  { %601 = vadd.xlane.f32.xlu1 %v600_v38  ;;  %526 = vadd.xlane.f32.xlu0 %v525_v50  ;;  %v633_v50 = vsel %vm64_vm0, %v1557_v26, 0.0 }
 0x11c   :  { %529 = vadd.xlane.f32.xlu1 %v528_v63  ;;  %288 = vadd.xlane.f32.xlu0 %v287_v36  ;;  %v636_v63 = vsel %vm64_vm0, %v1565_v39, 0.0  ;;  %vm850_vm0 = vcmask 7168  }
 0x120   :  { %291 = vadd.xlane.f32.xlu1 %v290_v23  ;;  %604 = vadd.xlane.f32.xlu0 %v603_v0 }
 0x124   :  { %607 = vadd.xlane.f32.xlu1 %v606_v6  ;;  %532 = vadd.xlane.f32.xlu0 %v531_v22 }
 0x128   :  { %535 = vadd.xlane.f32.xlu1 %v534_v2  ;;  %294 = vadd.xlane.f32.xlu0 %v293_v4 }
 0x12a   :  { %v223_v16 = vpop.xlane.xlu0 %222 }
 0x12c   :  { %297 = vadd.xlane.f32.xlu1 %v296_v48  ;;  %610 = vadd.xlane.f32.xlu0 %v609_v35 }
 0x12e   :  { %v226_v56 = vpop.xlane.xlu1 %225  ;;  %v229_v31 = vpop.xlane.xlu0 %228 }
 0x12f   :  { %986 = vlog2.f32 %v226_v56 }
 0x130   :  { %613 = vadd.xlane.f32.xlu1 %v612_v8  ;;  %538 = vadd.xlane.f32.xlu0 %v537_v15  ;;  %988 = vlog2.f32 %v223_v16 }
 0x131   :  { %990 = vlog2.f32 %v229_v31 }
 0x132   :  { %v235_v43 = vpop.xlane.xlu1 %234  ;;  %v232_v30 = vpop.xlane.xlu0 %231 }
 0x133   :  { %992 = vlog2.f32 %v232_v30 }
 0x134   :  { %616 = vadd.xlane.f32.xlu1 %v615_v52  ;;  %541 = vadd.xlane.f32.xlu0 %v540_v27  ;;  %994 = vlog2.f32 %v235_v43 }
 0x136   :  { %v241_v25 = vpop.xlane.xlu1 %240  ;;  %v238_v20 = vpop.xlane.xlu0 %237 }
 0x137   :  { %996 = vlog2.f32 %v238_v20 }
 0x138   :  { %619 = vadd.xlane.f32.xlu1 %v618_v40  ;;  %544 = vadd.xlane.f32.xlu0 %v543_v28  ;;  %998 = vlog2.f32 %v241_v25 }
 0x13a   :  { %v1631_v12 = vpop.xlane.xlu1 %246  ;;  %v244_v17 = vpop.xlane.xlu0 %243 }
 0x13b   :  { %1000 = vlog2.f32 %v244_v17 }
 0x13c   :  { %622 = vadd.xlane.f32.xlu1 %v621_v46  ;;  %547 = vadd.xlane.f32.xlu0 %v546_v10  ;;  %v987_v38 = vpop.eup %986  ;;  %1002 = vlog2.f32 %v1631_v12 }
 0x13d   :  { %v302_v3 = vmul.f32 0.6931472, %v987_v38  ;;  %v989_v55 = vpop.eup %988 }
 0x13e   :  { %v300_v23 = vmul.f32 0.6931472, %v989_v55  ;;  %v991_v14 = vpop.eup %990 }
 0x13f   :  { %v304_v6 = vmul.f32 0.6931472, %v991_v14 }
 0x140   :  { %625 = vadd.xlane.f32.xlu1 %v624_v32  ;;  %550 = vadd.xlane.f32.xlu0 %v549_v18  ;;  %v993_v39 = vpop.eup %992 }
 0x141   :  { %v306_v42 = vmul.f32 0.6931472, %v993_v39  ;;  %v995_v52 = vpop.eup %994 }
 0x142   :  { %v308_v16 = vmul.f32 0.6931472, %v995_v52 }
 0x144   :  { %628 = vadd.xlane.f32.xlu1 %v627_v59  ;;  %553 = vadd.xlane.f32.xlu0 %v552_v11  ;;  %v997_v46 = vpop.eup %996 }
 0x145   :  { %v310_v54 = vmul.f32 0.6931472, %v997_v46 }
 0x148   :  { %631 = vadd.xlane.f32.xlu1 %v630_v49  ;;  %556 = vadd.xlane.f32.xlu0 %v555_v62  ;;  %v999_v49 = vpop.eup %998 }
 0x149   :  { %v312_v38 = vmul.f32 0.6931472, %v999_v49  ;;  %v1001_v14 = vpop.eup %1000 }
 0x14c   :  { %634 = vadd.xlane.f32.xlu1 %v633_v50  ;;  %559 = vadd.xlane.f32.xlu0 %v558_v13 }
 0x14d   :  { %v488_v1 = vpop.xlane.xlu1 %487 }
 0x14e   :  { %v640_v34 = vmul.f32 0.9, %v488_v1 }
 0x150   :  { %v666_v36 = vsub.f32 %v302_v3, %v640_v34  ;;  %637 = vadd.xlane.f32.xlu0 %v636_v63 }
 0x151   :  { %v485_v37 = vpop.xlane.xlu0 %484 }
 0x152   :  { %v639_v0 = vmul.f32 0.9, %v485_v37 }
 0x154   :  { %v665_v26 = vsub.f32 %v300_v23, %v639_v0 }
 0x155   :  { %v491_v58 = vpop.xlane.xlu1 %490  ;;  %v1638_v24 = vpop.xlane.xlu0 %249 }
 0x156   :  { %v641_v22 = vmul.f32 0.9, %v491_v58  ;;  %1004 = vlog2.f32 %v1638_v24 }
 0x158   :  { %v667_v57 = vsub.f32 %v304_v6, %v641_v22 }
 0x159   :  { %v566_v29 = vpop.xlane.xlu1 %565  ;;  %v563_v41 = vpop.xlane.xlu0 %562 }
 0x15a   :  { %v692_v44 = vmul.f32 0.0027027028, %v566_v29  ;;  %v691_v2 = vmul.f32 0.0027027028, %v563_v41 }
 0x15c   :  { %v718_v4 = vsub.f32 %v666_v36, %v692_v44  ;;  %v717_v7 = vsub.f32 %v665_v26, %v691_v2 }
 0x15d   :  { %v494_v48 = vpop.xlane.xlu1 %493  ;;  %v1640_v35 = vpop.xlane.xlu0 %252 }
 0x15e   :  { %v852_v5 = vsel %vm850_vm0, %v718_v4, 0.0  ;;  %v851_v61 = vsel %vm850_vm0, %v717_v7, 0.0  ;;  %v642_v8 = vmul.f32 0.9, %v494_v48  ;;  %1006 = vlog2.f32 %v1640_v35  ;;  %v1003_v48 = vpop.eup %1002 }
 0x15f   :  { %v853_v15 = vadd.f32 %v852_v5, %v851_v61 }
 0x160   :  { %v668_v47 = vsub.f32 %v306_v42, %v642_v8 }
 0x161   :  { %v1644_v21 = vpop.xlane.xlu1 %255  ;;  %v569_v19 = vpop.xlane.xlu0 %568 }
 0x162   :  { %v693_v27 = vmul.f32 0.0027027028, %v569_v19  ;;  %1008 = vlog2.f32 %v1644_v21 }
 0x164   :  { %v719_v45 = vsub.f32 %v667_v57, %v693_v27  ;;  %v314_v57 = vmul.f32 0.6931472, %v1001_v14 }
 0x165   :  { %v572_v56 = vpop.xlane.xlu1 %571  ;;  %v497_v40 = vpop.xlane.xlu0 %496 }
 0x166   :  { %v854_v28 = vsel %vm850_vm0, %v719_v45, 0.0  ;;  %v694_v33 = vmul.f32 0.0027027028, %v572_v56  ;;  %v643_v31 = vmul.f32 0.9, %v497_v40 }
 0x167   :  { %v855_v10 = vadd.f32 %v854_v28, %v853_v15  ;;  %v316_v15 = vmul.f32 0.6931472, %v1003_v48 }
 0x168   :  { %v720_v60 = vsub.f32 %v668_v47, %v694_v33  ;;  %v669_v43 = vsub.f32 %v308_v16, %v643_v31  ;;  %v1005_v47 = vpop.eup %1004 }
 0x169   :  { %v500_v32 = vpop.xlane.xlu1 %499  ;;  %v1647_v18 = vpop.xlane.xlu0 %258  ;;  %v318_v35 = vmul.f32 0.6931472, %v1005_v47 }
 0x16a   :  { %v856_v30 = vsel %vm850_vm0, %v720_v60, 0.0  ;;  %v644_v25 = vmul.f32 0.9, %v500_v32  ;;  %1010 = vlog2.f32 %v1647_v18 }
 0x16b   :  { %v857_v59 = vadd.f32 %v856_v30, %v855_v10  ;;  %v1007_v21 = vpop.eup %1006 }
 0x16c   :  { %v670_v11 = vsub.f32 %v310_v54, %v644_v25 }
 0x16d   :  { %v1650_v53 = vpop.xlane.xlu1 %261  ;;  %v575_v20 = vpop.xlane.xlu0 %574 }
 0x16e   :  { %v695_v62 = vmul.f32 0.0027027028, %v575_v20  ;;  %1012 = vlog2.f32 %v1650_v53 }
 0x170   :  { %v721_v51 = vsub.f32 %v669_v43, %v695_v62 }
 0x171   :  { %v578_v50 = vpop.xlane.xlu1 %577  ;;  %v503_v13 = vpop.xlane.xlu0 %502 }
 0x172   :  { %v858_v1 = vsel %vm850_vm0, %v721_v51, 0.0  ;;  %v696_v3 = vmul.f32 0.0027027028, %v578_v50  ;;  %v645_v34 = vmul.f32 0.9, %v503_v13 }
 0x173   :  { %v859_v55 = vadd.f32 %v858_v1, %v857_v59  ;;  %v320_v59 = vmul.f32 0.6931472, %v1007_v21 }
 0x174   :  { %v722_v63 = vsub.f32 %v670_v11, %v696_v3  ;;  %v671_v36 = vsub.f32 %v312_v38, %v645_v34  ;;  %v1009_v11 = vpop.eup %1008 }
 0x175   :  { %v506_v17 = vpop.xlane.xlu1 %505  ;;  %v1654_v37 = vpop.xlane.xlu0 %264  ;;  %v322_v50 = vmul.f32 0.6931472, %v1009_v11 }
 0x176   :  { %v860_v23 = vsel %vm850_vm0, %v722_v63, 0.0  ;;  %v646_v6 = vmul.f32 0.9, %v506_v17  ;;  %1014 = vlog2.f32 %v1654_v37 }
 0x177   :  { %v861_v0 = vadd.f32 %v860_v23, %v859_v55  ;;  %v1011_v17 = vpop.eup %1010 }
 0x178   :  { %v672_v44 = vsub.f32 %v314_v57, %v646_v6  ;;  %v324_v6 = vmul.f32 0.6931472, %v1011_v17 }
 0x179   :  { %v1658_v26 = vpop.xlane.xlu1 %267  ;;  %v581_v58 = vpop.xlane.xlu0 %580 }
 0x17a   :  { %v697_v22 = vmul.f32 0.0027027028, %v581_v58  ;;  %1016 = vlog2.f32 %v1658_v26 }
 0x17c   :  { %v723_v29 = vsub.f32 %v671_v36, %v697_v22  ;;  %v1013_v22 = vpop.eup %1012 }
 0x17d   :  { %v584_v41 = vpop.xlane.xlu1 %583  ;;  %v509_v12 = vpop.xlane.xlu0 %508 }
 0x17e   :  { %v862_v2 = vsel %vm850_vm0, %v723_v29, 0.0  ;;  %v698_v39 = vmul.f32 0.0027027028, %v584_v41  ;;  %v647_v61 = vmul.f32 0.9, %v509_v12 }
 0x17f   :  { %v863_v4 = vadd.f32 %v862_v2, %v861_v0  ;;  %v326_v2 = vmul.f32 0.6931472, %v1013_v22 }
 0x180   :  { %v724_v7 = vsub.f32 %v672_v44, %v698_v39  ;;  %v673_v27 = vsub.f32 %v316_v15, %v647_v61 }
 0x181   :  { %v512_v24 = vpop.xlane.xlu1 %511  ;;  %v1662_v42 = vpop.xlane.xlu0 %270 }
 0x182   :  { %v864_v5 = vsel %vm850_vm0, %v724_v7, 0.0  ;;  %v648_v45 = vmul.f32 0.9, %v512_v24  ;;  %1018 = vlog2.f32 %v1662_v42 }
 0x183   :  { %v865_v8 = vadd.f32 %v864_v5, %v863_v4 }
 0x184   :  { %v674_v33 = vsub.f32 %v318_v35, %v648_v45 }
 0x185   :  { %v1666_v19 = vpop.xlane.xlu1 %273  ;;  %v587_v52 = vpop.xlane.xlu0 %586 }
 0x186   :  { %v699_v16 = vmul.f32 0.0027027028, %v587_v52  ;;  %1020 = vlog2.f32 %v1666_v19 }
 0x188   :  { %v725_v56 = vsub.f32 %v673_v27, %v699_v16 }
 0x189   :  { %v590_v40 = vpop.xlane.xlu1 %589  ;;  %v515_v28 = vpop.xlane.xlu0 %514 }
 0x18a   :  { %v866_v31 = vsel %vm850_vm0, %v725_v56, 0.0  ;;  %v700_v46 = vmul.f32 0.0027027028, %v590_v40  ;;  %v649_v30 = vmul.f32 0.9, %v515_v28 }
 0x18b   :  { %v867_v10 = vadd.f32 %v866_v31, %v865_v8 }
 0x18c   :  { %v726_v60 = vsub.f32 %v674_v33, %v700_v46  ;;  %v675_v62 = vsub.f32 %v320_v59, %v649_v30 }
 0x18d   :  { %v518_v43 = vpop.xlane.xlu1 %517  ;;  %v277_v32 = vpop.xlane.xlu0 %276 }
 0x18e   :  { %v868_v54 = vsel %vm850_vm0, %v726_v60, 0.0  ;;  %v650_v51 = vmul.f32 0.9, %v518_v43  ;;  %1022 = vlog2.f32 %v277_v32  ;;  %v1015_v60 = vpop.eup %1014 }
 0x18f   :  { %v869_v25 = vadd.f32 %v868_v54, %v867_v10  ;;  %v1017_v21 = vpop.eup %1016  ;;  %v328_v26 = vmul.f32 0.6931472, %v1015_v60 }
 0x190   :  { %v676_v3 = vsub.f32 %v322_v50, %v650_v51  ;;  %v1019_v42 = vpop.eup %1018  ;;  %v330_v59 = vmul.f32 0.6931472, %v1017_v21 }
 0x191   :  { %v280_v20 = vpop.xlane.xlu1 %279  ;;  %v593_v49 = vpop.xlane.xlu0 %592  ;;  %v332_v50 = vmul.f32 0.6931472, %v1019_v42 }
 0x192   :  { %v701_v38 = vmul.f32 0.0027027028, %v593_v49  ;;  %1024 = vlog2.f32 %v280_v20 }
 0x193   :  { %v1021_v19 = vpop.eup %1020 }
 0x194   :  { %v727_v13 = vsub.f32 %v675_v62, %v701_v38 }
 0x195   :  { %v596_v18 = vpop.xlane.xlu1 %595  ;;  %v521_v1 = vpop.xlane.xlu0 %520 }
 0x196   :  { %v870_v34 = vsel %vm850_vm0, %v727_v13, 0.0  ;;  %v702_v55 = vmul.f32 0.0027027028, %v596_v18  ;;  %v651_v14 = vmul.f32 0.9, %v521_v1 }
 0x197   :  { %v871_v63 = vadd.f32 %v870_v34, %v869_v25 }
 0x198   :  { %v728_v36 = vsub.f32 %v676_v3, %v702_v55  ;;  %v677_v41 = vsub.f32 %v324_v6, %v651_v14  ;;  %v334_v3 = vmul.f32 0.6931472, %v1021_v19 }
 0x199   :  { %v524_v23 = vpop.xlane.xlu1 %523  ;;  %v283_v0 = vpop.xlane.xlu0 %282 }
 0x19a   :  { %v872_v53 = vsel %vm850_vm0, %v728_v36, 0.0  ;;  %v652_v12 = vmul.f32 0.9, %v524_v23  ;;  %1026 = vlog2.f32 %v283_v0 }
 0x19b   :  { %v873_v58 = vadd.f32 %v872_v53, %v871_v63  ;;  %v1023_v38 = vpop.eup %1022 }
 0x19c   :  { %v678_v48 = vsub.f32 %v326_v2, %v652_v12  ;;  %v336_v53 = vmul.f32 0.6931472, %v1023_v38 }
 0x19d   :  { %v286_v57 = vpop.xlane.xlu1 %285  ;;  %v599_v29 = vpop.xlane.xlu0 %598 }
 0x19e   :  { %v703_v44 = vmul.f32 0.0027027028, %v599_v29  ;;  %1028 = vlog2.f32 %v286_v57 }
 0x19f   :  { %v1025_v63 = vpop.eup %1024 }
 0x1a0   :  { %v729_v39 = vsub.f32 %v677_v41, %v703_v44  ;;  %v338_v41 = vmul.f32 0.6931472, %v1025_v63 }
 0x1a1   :  { %v602_v4 = vpop.xlane.xlu1 %601  ;;  %v527_v7 = vpop.xlane.xlu0 %526 }
 0x1a2   :  { %v874_v24 = vsel %vm850_vm0, %v729_v39, 0.0  ;;  %v704_v5 = vmul.f32 0.0027027028, %v602_v4  ;;  %v653_v43 = vmul.f32 0.9, %v527_v7 }
 0x1a3   :  { %v875_v61 = vadd.f32 %v874_v24, %v873_v58 }
 0x1a4   :  { %v730_v8 = vsub.f32 %v678_v48, %v704_v5  ;;  %v679_v11 = vsub.f32 %v328_v26, %v653_v43 }
 0x1a5   :  { %v530_v15 = vpop.xlane.xlu1 %529  ;;  %v289_v47 = vpop.xlane.xlu0 %288 }
 0x1a6   :  { %v876_v52 = vsel %vm850_vm0, %v730_v8, 0.0  ;;  %1030 = vlog2.f32 %v289_v47  ;;  %v654_v30 = vmul.f32 0.9, %v530_v15 }
 0x1a7   :  { %v1676_v27 = vadd.f32 %v876_v52, %v875_v61  ;;  %v1027_v6 = vpop.eup %1026 }
 0x1a8   :  { %v680_v13 = vsub.f32 %v330_v59, %v654_v30  ;;  %v340_v5 = vmul.f32 0.6931472, %v1027_v6 }
 0x1a9   :  { %v292_v45 = vpop.xlane.xlu1 %291  ;;  %v605_v16 = vpop.xlane.xlu0 %604 }
 0x1aa   :  { %v705_v25 = vmul.f32 0.0027027028, %v605_v16  ;;  %1032 = vlog2.f32 %v292_v45 }
 0x1ab   :  { %v1029_v2 = vpop.eup %1028 }
 0x1ac   :  { %v731_v18 = vsub.f32 %v679_v11, %v705_v25 }
 0x1ad   :  { %v608_v35 = vpop.xlane.xlu1 %607  ;;  %v533_v56 = vpop.xlane.xlu0 %532 }
 0x1ae   :  { %v706_v32 = vmul.f32 0.0027027028, %v608_v35  ;;  %v655_v20 = vmul.f32 0.9, %v533_v56  ;;  %v878_v22 = vsel %vm850_vm0, %v731_v18, 0.0 }
 0x1af   :  { %v879_v61 = vadd.f32 %v878_v22, %v1676_v27  ;;  %v342_v35 = vmul.f32 0.6931472, %v1029_v2 }
 0x1b0   :  { %v732_v36 = vsub.f32 %v680_v13, %v706_v32  ;;  %v681_v17 = vsub.f32 %v332_v50, %v655_v20 }
 0x1b1   :  { %v536_v40 = vpop.xlane.xlu1 %535  ;;  %v295_v28 = vpop.xlane.xlu0 %294 }
 0x1b2   :  { %v656_v51 = vmul.f32 0.9, %v536_v40  ;;  %1034 = vlog2.f32 %v295_v28  ;;  %v880_v39 = vsel %vm850_vm0, %v732_v36, 0.0 }
 0x1b3   :  { %v1031_v15 = vpop.eup %1030  ;;  %v881_v56 = vadd.f32 %v880_v39, %v879_v61 }
 0x1b4   :  { %v682_v14 = vsub.f32 %v334_v3, %v656_v51  ;;  %v344_v43 = vmul.f32 0.6931472, %v1031_v15  ;;  %v745_v3 = vshrl.u32 %v351_v9, 7 }
 0x1b5   :  { %v298_v33 = vpop.xlane.xlu1 %297  ;;  %v611_v31 = vpop.xlane.xlu0 %610 }
 0x1b6   :  { %v707_v1 = vmul.f32 0.0027027028, %v611_v31  ;;  %1036 = vlog2.f32 %v298_v33 }
 0x1b7   :  { %v1033_v21 = vpop.eup %1032 }
 0x1b8   :  { %v733_v57 = vsub.f32 %v681_v17, %v707_v1  ;;  %v346_v19 = vmul.f32 0.6931472, %v1033_v21 }
 0x1b9   :  { %v614_v46 = vpop.xlane.xlu1 %613  ;;  %v539_v10 = vpop.xlane.xlu0 %538 }
 0x1ba   :  { %v708_v34 = vmul.f32 0.0027027028, %v614_v46  ;;  %v657_v55 = vmul.f32 0.9, %v539_v10  ;;  %v882_v47 = vsel %vm850_vm0, %v733_v57, 0.0  ;;  %v770_v57 = vadd.s32 200, %v745_v3 }
 0x1bb   :  { %v883_v27 = vadd.f32 %v882_v47, %v881_v56 }
 0x1bc   :  { %v734_v12 = vsub.f32 %v682_v14, %v708_v34  ;;  %v683_v44 = vsub.f32 %v336_v53, %v657_v55  ;;  %vm823_vm12 = vcmp.lt.s32.totalorder %v770_v57, 203 }
 0x1bd   :  { %v617_v37 = vpop.xlane.xlu1 %616  ;;  %v542_v54 = vpop.xlane.xlu0 %541 }
 0x1be   :  { %v709_v58 = vmul.f32 0.0027027028, %v617_v37  ;;  %v658_v29 = vmul.f32 0.9, %v542_v54  ;;  %v884_v40 = vsel %vm850_vm0, %v734_v12, 0.0 }
 0x1bf   :  { %v885_v42 = vadd.f32 %v884_v40, %v883_v27  ;;  %v1035_v59 = vpop.eup %1034 }
 0x1c0   :  { %v735_v8 = vsub.f32 %v683_v44, %v709_v58  ;;  %v684_v52 = vsub.f32 %v338_v41, %v658_v29  ;;  %v348_v34 = vmul.f32 0.6931472, %v1035_v59 }
 0x1c1   :  { %v620_v49 = vpop.xlane.xlu1 %619  ;;  %v545_v62 = vpop.xlane.xlu0 %544 }
 0x1c2   :  { %v710_v4 = vmul.f32 0.0027027028, %v620_v49  ;;  %v659_v7 = vmul.f32 0.9, %v545_v62  ;;  %v886_v37 = vsel %vm850_vm0, %v735_v8, 0.0 }
 0x1c3   :  { %v887_v51 = vadd.f32 %v886_v37, %v885_v42  ;;  %v1037_v63 = vpop.eup %1036 }
 0x1c4   :  { %v736_v28 = vsub.f32 %v684_v52, %v710_v4  ;;  %v685_v33 = vsub.f32 %v340_v5, %v659_v7  ;;  %v350_v29 = vmul.f32 0.6931472, %v1037_v63 }
 0x1c5   :  { %v623_v23 = vpop.xlane.xlu1 %622  ;;  %v548_v0 = vpop.xlane.xlu0 %547 }
 0x1c6   :  { %v711_v45 = vmul.f32 0.0027027028, %v623_v23  ;;  %v660_v16 = vmul.f32 0.9, %v548_v0  ;;  %v888_v11 = vsel %vm850_vm0, %v736_v28, 0.0 }
 0x1c7   :  { %v889_v55 = vadd.f32 %v888_v11, %v887_v51 }
 0x1c8   :  { %v737_v54 = vsub.f32 %v685_v33, %v711_v45  ;;  %v686_v26 = vsub.f32 %v342_v35, %v660_v16 }
 0x1c9   :  { %v626_v48 = vpop.xlane.xlu1 %625  ;;  %v551_v24 = vpop.xlane.xlu0 %550 }
 0x1ca   :  { %v712_v31 = vmul.f32 0.0027027028, %v626_v48  ;;  %v661_v46 = vmul.f32 0.9, %v551_v24  ;;  %v890_v13 = vsel %vm850_vm0, %v737_v54, 0.0 }
 0x1cb   :  { %v891_v53 = vadd.f32 %v890_v13, %v889_v55 }
 0x1cc   :  { %v738_v32 = vsub.f32 %v686_v26, %v712_v31  ;;  %v687_v20 = vsub.f32 %v344_v43, %v661_v46 }
 0x1cd   :  { %v629_v10 = vpop.xlane.xlu1 %628  ;;  %v554_v60 = vpop.xlane.xlu0 %553 }
 0x1ce   :  { %v713_v30 = vmul.f32 0.0027027028, %v629_v10  ;;  %v662_v25 = vmul.f32 0.9, %v554_v60  ;;  %v892_v36 = vsel %vm850_vm0, %v738_v32, 0.0 }
 0x1cf   :  { %v893_v41 = vadd.f32 %v892_v36, %v891_v53 }
 0x1d0   :  { %v739_v18 = vsub.f32 %v687_v20, %v713_v30  ;;  %v688_v1 = vsub.f32 %v346_v19, %v662_v25 }
 0x1d1   :  { %v632_v49 = vpop.xlane.xlu1 %631  ;;  %v557_v62 = vpop.xlane.xlu0 %556 }
 0x1d2   :  { %v714_v38 = vmul.f32 0.0027027028, %v632_v49  ;;  %v663_v50 = vmul.f32 0.9, %v557_v62  ;;  %v894_v22 = vsel %vm850_vm0, %v739_v18, 0.0 }
 0x1d3   :  { %v895_v2 = vadd.f32 %v894_v22, %v893_v41 }
 0x1d4   :  { %v740_v17 = vsub.f32 %v688_v1, %v714_v38  ;;  %v689_v14 = vsub.f32 %v348_v34, %v663_v50 }
 0x1d5   :  { %v635_v23 = vpop.xlane.xlu1 %634  ;;  %v560_v0 = vpop.xlane.xlu0 %559 }
 0x1d6   :  { %v715_v58 = vmul.f32 0.0027027028, %v635_v23  ;;  %v664_v6 = vmul.f32 0.9, %v560_v0  ;;  %v896_v9 = vsel %vm850_vm0, %v740_v17, 0.0 }
 0x1d7   :  { %v897_v48 = vadd.f32 %v896_v9, %v895_v2 }
 0x1d8   :  { %v741_v12 = vsub.f32 %v689_v14, %v715_v58  ;;  %v690_v39 = vsub.f32 %v350_v29, %v664_v6 }
 0x1d9   :  { %v638_v44 = vpop.xlane.xlu0 %637 }
 0x1da   :  { %v716_v4 = vmul.f32 0.0027027028, %v638_v44  ;;  %v898_v7 = vsel %vm850_vm0, %v741_v12, 0.0 }
 0x1db   :  { %v899_v5 = vadd.f32 %v898_v7, %v897_v48 }
 0x1dc   :  { %v742_v24 = vsub.f32 %v690_v39, %v716_v4 }
 0x1de   :  { %v849_v61 = vsel %vm823_vm12, %v742_v24, 0.0 }
 0x1df   :  { %v900_v8 = vsel %vm850_vm0, %v849_v61, 0.0 }
 0x1e0   :  { %v901_v15 = vadd.f32 %v900_v8, %v899_v5 }
 0x1e2   :  { %902 = vadd.xlane.f32.xlu1 %v901_v15 }
 0x26b   :  { %v903_v47 = vpop.xlane.xlu1 %902 }
 0x26c   :  { %v904_v52 = vrot.slane %v903_v47, 4 }
 0x26e   :  { %v905_v45 = vadd.f32 %v904_v52, %v903_v47 }
 0x270   :  { %v906_v16 = vrot.slane %v905_v45, 2 }
 0x272   :  { %v907_v35 = vadd.f32 %v906_v16, %v905_v45 }
 0x274   :  { %v908_v56 = vrot.slane %v907_v35, 1 }
 0x276   :  { %v909_v40 = vadd.f32 %v908_v56, %v907_v35 }
 0x278   :  { %928 = vpush %v909_v40 }
 0x2a9   :  { %s929_s28 = spop %928 }
 0x2aa   :  { %v911_v28 = vstv %s929_s28 }
 0x2ab   :  { %913 = vst.msk [vmem:[#allocation2] sm:$0x1] %vm912_vm13, %v911_v28 }
 0x2ac   :  { %1049 = shalt.err (!%p1046_p4)
}
 0x2ad   :  { %923 = dma.vmem_to_hbm [thread:$0]  %s921_s27, 16, %s1701_s2, [#allocation3]  }
 0x2ae   :  { %1058 = dma.done.wait [#allocation3], 16  }
 0x2af   :  { %1059 = vsyncadd [#allocation3], 4294967280 }
 0x2b0   :  { %927 = vsyncpa [#allocation3], 1 }

</bundles_post_ra>
